<compile_context>
chip_gen: v6e
topology: v6e:2x2x1
jax: 0.10.0
libtpu: 0.0.40
codegen_flags: <defaults>
</compile_context>

<pallas_src>
import jax
import jax.numpy as jnp
import numpy as np
from jax.experimental import pallas as pl
from jax.experimental.pallas import tpu as pltpu

# ---- model hyper-parameters (small, consistent with the module) -------------
B = 8              # batch
INPUT_SIZE = 64    # input_size
HIDDEN = 32        # hidden_size
NUM_CLASSES = 1    # num_classes (module default)
BN_EPS = 1e-5      # nn.BatchNorm1d default eps


# ---- Pallas kernel -----------------------------------------------------------
def mlp_bn_kernel(x_ref, w1_ref, b1_ref, s1_ref, t1_ref,
                  w2_ref, b2_ref, s2_ref, t2_ref, out_ref):
    x = x_ref[...]                                                    # (B, IN)

    # fc1: one (B, IN) @ (IN, H) MXU contraction + lane-broadcast bias
    h = jnp.dot(x, w1_ref[...], preferred_element_type=jnp.float32) + b1_ref[...]
    h = jnp.maximum(h, 0.0)                                           # ReLU
    # dense1_bn (eval mode): per-feature affine, scale/shift precomputed
    h = h * s1_ref[...] + t1_ref[...]

    # fc2: one (B, H) @ (H, C) MXU contraction
    y = jnp.dot(h, w2_ref[...], preferred_element_type=jnp.float32) + b2_ref[...]
    # dense2_bn (eval mode)
    y = y * s2_ref[...] + t2_ref[...]

    out_ref[...] = y.astype(out_ref.dtype)                            # (B, C)
    # TODO(synk): training-mode BatchNorm (batch statistics + running-stat
    # updates) is not implemented; this is the inference/eval forward.


def neural_net_forward(x, kparams):
    """x: (B, INPUT_SIZE) float32 -> (B, NUM_CLASSES) float32."""
    full = lambda a: pl.BlockSpec(a.shape, lambda i: (0,) * a.ndim)
    in_specs = [full(x)] + [full(p) for p in kparams]

    return pl.pallas_call(
        mlp_bn_kernel,
        out_shape=jax.ShapeDtypeStruct((x.shape[0], NUM_CLASSES), jnp.float32),
        grid=(1,),                       # single invocation: whole batch at once
        in_specs=in_specs,
        out_specs=pl.BlockSpec((x.shape[0], NUM_CLASSES), lambda i: (0, 0)),
        compiler_params=pltpu.CompilerParams(
            dimension_semantics=("arbitrary",)),
    )(x, *kparams)


# ---- deterministic parameter init (PyTorch layouts, then convert) -----------
def make_params(key):
    ks = jax.random.split(key, 12)

    def linear_init(kw, kb, out_dim, in_dim):
        bound = 1.0 / np.sqrt(in_dim)          # PyTorch nn.Linear default init
        w = jax.random.uniform(kw, (out_dim, in_dim), jnp.float32, -bound, bound)
        b = jax.random.uniform(kb, (out_dim,), jnp.float32, -bound, bound)
        return w, b

    # PyTorch-layout parameters
    w1_t, b1_t = linear_init(ks[0], ks[1], HIDDEN, INPUT_SIZE)        # (H, IN)
    w2_t, b2_t = linear_init(ks[2], ks[3], NUM_CLASSES, HIDDEN)       # (C, H)

    def bn_params(kg, kb, km, kv, n):
        gamma = jax.random.uniform(kg, (n,), jnp.float32, 0.5, 1.5)
        beta = 0.1 * jax.random.normal(kb, (n,), jnp.float32)
        rmean = 0.1 * jax.random.normal(km, (n,), jnp.float32)
        rvar = jax.random.uniform(kv, (n,), jnp.float32, 0.5, 1.5)
        return gamma, beta, rmean, rvar

    g1, be1, rm1, rv1 = bn_params(ks[4], ks[5], ks[6], ks[7], HIDDEN)
    g2, be2, rm2, rv2 = bn_params(ks[8], ks[9], ks[10], ks[11], NUM_CLASSES)

    torch_layout = (w1_t, b1_t, g1, be1, rm1, rv1,
                    w2_t, b2_t, g2, be2, rm2, rv2)

    # Kernel layouts: weights (in, out); BN folded to scale/shift; all 2D (1, n)
    # rows for clean lane broadcast in the kernel.
    s1 = g1 / jnp.sqrt(rv1 + BN_EPS)
    t1 = be1 - rm1 * s1
    s2 = g2 / jnp.sqrt(rv2 + BN_EPS)
    t2 = be2 - rm2 * s2
    kern_layout = (
        w1_t.T, b1_t[None, :], s1[None, :], t1[None, :],
        w2_t.T, b2_t[None, :], s2[None, :], t2[None, :],
    )
    return torch_layout, kern_layout


# ---- pure-JAX reference (mirrors the PyTorch eval-mode forward exactly) -----
def torch_reference(x, tparams):
    (w1, b1, g1, be1, rm1, rv1, w2, b2, g2, be2, rm2, rv2) = tparams
    h = x @ w1.T + b1                                    # fc1
    h = jnp.maximum(h, 0.0)                              # relu
    h = (h - rm1) / jnp.sqrt(rv1 + BN_EPS) * g1 + be1    # dense1_bn (eval)
    y = h @ w2.T + b2                                    # fc2
    y = (y - rm2) / jnp.sqrt(rv2 + BN_EPS) * g2 + be2    # dense2_bn (eval)
    return y


if __name__ == "__main__":
    key = jax.random.PRNGKey(0)
    pkey, xkey = jax.random.split(key)
    torch_params, kern_params = make_params(pkey)

    x = jax.random.normal(xkey, (B, INPUT_SIZE), jnp.float32)

    out = neural_net_forward(x, kern_params)
    out = jax.block_until_ready(out)

    ref = jax.block_until_ready(torch_reference(x, torch_params))
    np.testing.assert_allclose(np.asarray(out), np.asarray(ref),
                               rtol=1e-5, atol=1e-5)
    assert out.shape == (B, NUM_CLASSES) and out.dtype == jnp.float32

    print("KERNEL_OK")
</pallas_src>

<mosaic_0001>
module attributes {stable_mosaic.version = 11 : i64} {
  func.func @mlp_bn_kernel(%arg0: i32, %arg1: memref<8x64xf32, #tpu.memory_space<vmem>>, %arg2: memref<64x32xf32, #tpu.memory_space<vmem>>, %arg3: memref<1x32xf32, #tpu.memory_space<vmem>>, %arg4: memref<1x32xf32, #tpu.memory_space<vmem>>, %arg5: memref<1x32xf32, #tpu.memory_space<vmem>>, %arg6: memref<32x1xf32, #tpu.memory_space<vmem>>, %arg7: memref<1x1xf32, #tpu.memory_space<vmem>>, %arg8: memref<1x1xf32, #tpu.memory_space<vmem>>, %arg9: memref<1x1xf32, #tpu.memory_space<vmem>>, %arg10: memref<8x1xf32, #tpu.memory_space<vmem>>) attributes {dimension_semantics = [#tpu.dimension_semantics<arbitrary>], iteration_bounds = array<i64: 1>, scalar_prefetch = 0 : i64, scratch_operands = 0 : i64, tpu.core_type = #tpu.core_type<tc>, window_params = [{pipeline_mode = #tpu.pipeline_mode<synchronous>, transform_indices = @transform_0, window_bounds = array<i64: 8, 64>}, {pipeline_mode = #tpu.pipeline_mode<synchronous>, transform_indices = @transform_1, window_bounds = array<i64: 64, 32>}, {pipeline_mode = #tpu.pipeline_mode<synchronous>, transform_indices = @transform_2, window_bounds = array<i64: 1, 32>}, {pipeline_mode = #tpu.pipeline_mode<synchronous>, transform_indices = @transform_3, window_bounds = array<i64: 1, 32>}, {pipeline_mode = #tpu.pipeline_mode<synchronous>, transform_indices = @transform_4, window_bounds = array<i64: 1, 32>}, {pipeline_mode = #tpu.pipeline_mode<synchronous>, transform_indices = @transform_5, window_bounds = array<i64: 32, 1>}, {pipeline_mode = #tpu.pipeline_mode<synchronous>, transform_indices = @transform_6, window_bounds = array<i64: 1, 1>}, {pipeline_mode = #tpu.pipeline_mode<synchronous>, transform_indices = @transform_7, window_bounds = array<i64: 1, 1>}, {pipeline_mode = #tpu.pipeline_mode<synchronous>, transform_indices = @transform_8, window_bounds = array<i64: 1, 1>}, {pipeline_mode = #tpu.pipeline_mode<synchronous>, transform_indices = @transform_9, window_bounds = array<i64: 8, 1>}]} {
    %c0 = arith.constant 0 : index
    %c0_0 = arith.constant 0 : index
    %0 = vector.load %arg1[%c0, %c0_0] : memref<8x64xf32, #tpu.memory_space<vmem>>, vector<8x64xf32>
    %c0_1 = arith.constant 0 : index
    %c0_2 = arith.constant 0 : index
    %1 = vector.load %arg2[%c0_1, %c0_2] : memref<64x32xf32, #tpu.memory_space<vmem>>, vector<64x32xf32>
    %cst = arith.constant dense<0.000000e+00> : vector<8x32xf32>
    %2 = tpu.matmul %0, %1, %cst {dimension_numbers = #tpu.dot_dimension_numbers<[1], [0], [0], [1], [0, 0, 1, 1], [], []>} : vector<8x64xf32>, vector<64x32xf32>, vector<8x32xf32> -> vector<8x32xf32>
    %c0_3 = arith.constant 0 : index
    %c0_4 = arith.constant 0 : index
    %3 = vector.load %arg3[%c0_3, %c0_4] : memref<1x32xf32, #tpu.memory_space<vmem>>, vector<1x32xf32>
    %4 = vector.broadcast %3 : vector<1x32xf32> to vector<8x32xf32>
    %5 = arith.addf %2, %4 : vector<8x32xf32>
    %cst_5 = arith.constant 0.000000e+00 : f32
    %6 = vector.broadcast %cst_5 : f32 to vector<8x32xf32>
    %7 = arith.maximumf %5, %6 : vector<8x32xf32>
    %c0_6 = arith.constant 0 : index
    %c0_7 = arith.constant 0 : index
    %8 = vector.load %arg4[%c0_6, %c0_7] : memref<1x32xf32, #tpu.memory_space<vmem>>, vector<1x32xf32>
    %9 = vector.broadcast %8 : vector<1x32xf32> to vector<8x32xf32>
    %10 = arith.mulf %7, %9 : vector<8x32xf32>
    %c0_8 = arith.constant 0 : index
    %c0_9 = arith.constant 0 : index
    %11 = vector.load %arg5[%c0_8, %c0_9] : memref<1x32xf32, #tpu.memory_space<vmem>>, vector<1x32xf32>
    %12 = vector.broadcast %11 : vector<1x32xf32> to vector<8x32xf32>
    %13 = arith.addf %10, %12 : vector<8x32xf32>
    %c0_10 = arith.constant 0 : index
    %c0_11 = arith.constant 0 : index
    %14 = vector.load %arg6[%c0_10, %c0_11] : memref<32x1xf32, #tpu.memory_space<vmem>>, vector<32x1xf32>
    %cst_12 = arith.constant dense<0.000000e+00> : vector<8x1xf32>
    %15 = tpu.matmul %13, %14, %cst_12 {dimension_numbers = #tpu.dot_dimension_numbers<[1], [0], [0], [1], [0, 0, 1, 1], [], []>} : vector<8x32xf32>, vector<32x1xf32>, vector<8x1xf32> -> vector<8x1xf32>
    %c0_13 = arith.constant 0 : index
    %c0_14 = arith.constant 0 : index
    %16 = vector.load %arg7[%c0_13, %c0_14] : memref<1x1xf32, #tpu.memory_space<vmem>>, vector<1x1xf32>
    %17 = vector.broadcast %16 : vector<1x1xf32> to vector<8x1xf32>
    %18 = arith.addf %15, %17 : vector<8x1xf32>
    %c0_15 = arith.constant 0 : index
    %c0_16 = arith.constant 0 : index
    %19 = vector.load %arg8[%c0_15, %c0_16] : memref<1x1xf32, #tpu.memory_space<vmem>>, vector<1x1xf32>
    %20 = vector.broadcast %19 : vector<1x1xf32> to vector<8x1xf32>
    %21 = arith.mulf %18, %20 : vector<8x1xf32>
    %c0_17 = arith.constant 0 : index
    %c0_18 = arith.constant 0 : index
    %22 = vector.load %arg9[%c0_17, %c0_18] : memref<1x1xf32, #tpu.memory_space<vmem>>, vector<1x1xf32>
    %23 = vector.broadcast %22 : vector<1x1xf32> to vector<8x1xf32>
    %24 = arith.addf %21, %23 : vector<8x1xf32>
    %c0_19 = arith.constant 0 : index
    %c0_20 = arith.constant 0 : index
    %25 = vector.load %arg10[%c0_19, %c0_20] : memref<8x1xf32, #tpu.memory_space<vmem>>, vector<8x1xf32>
    tpu.vector_store %arg10[%c0_19, %c0_20], %24 {strides = array<i32>} : memref<8x1xf32, #tpu.memory_space<vmem>>, vector<8x1xf32>,
    return
  }
  func.func @transform_0(%arg0: i32) -> (i32, i32) {
    %c0_i32 = arith.constant 0 : i32
    %c0_i32_0 = arith.constant 0 : i32
    %c0_i32_1 = arith.constant 0 : i32
    return %c0_i32, %c0_i32_0 : i32, i32
  }
  func.func @transform_1(%arg0: i32) -> (i32, i32) {
    %c0_i32 = arith.constant 0 : i32
    %c0_i32_0 = arith.constant 0 : i32
    %c0_i32_1 = arith.constant 0 : i32
    return %c0_i32, %c0_i32_0 : i32, i32
  }
  func.func @transform_2(%arg0: i32) -> (i32, i32) {
    %c0_i32 = arith.constant 0 : i32
    %c0_i32_0 = arith.constant 0 : i32
    %c0_i32_1 = arith.constant 0 : i32
    return %c0_i32, %c0_i32_0 : i32, i32
  }
  func.func @transform_3(%arg0: i32) -> (i32, i32) {
    %c0_i32 = arith.constant 0 : i32
    %c0_i32_0 = arith.constant 0 : i32
    %c0_i32_1 = arith.constant 0 : i32
    return %c0_i32, %c0_i32_0 : i32, i32
  }
  func.func @transform_4(%arg0: i32) -> (i32, i32) {
    %c0_i32 = arith.constant 0 : i32
    %c0_i32_0 = arith.constant 0 : i32
    %c0_i32_1 = arith.constant 0 : i32
    return %c0_i32, %c0_i32_0 : i32, i32
  }
  func.func @transform_5(%arg0: i32) -> (i32, i32) {
    %c0_i32 = arith.constant 0 : i32
    %c0_i32_0 = arith.constant 0 : i32
    %c0_i32_1 = arith.constant 0 : i32
    return %c0_i32, %c0_i32_0 : i32, i32
  }
  func.func @transform_6(%arg0: i32) -> (i32, i32) {
    %c0_i32 = arith.constant 0 : i32
    %c0_i32_0 = arith.constant 0 : i32
    %c0_i32_1 = arith.constant 0 : i32
    return %c0_i32, %c0_i32_0 : i32, i32
  }
  func.func @transform_7(%arg0: i32) -> (i32, i32) {
    %c0_i32 = arith.constant 0 : i32
    %c0_i32_0 = arith.constant 0 : i32
    %c0_i32_1 = arith.constant 0 : i32
    return %c0_i32, %c0_i32_0 : i32, i32
  }
  func.func @transform_8(%arg0: i32) -> (i32, i32) {
    %c0_i32 = arith.constant 0 : i32
    %c0_i32_0 = arith.constant 0 : i32
    %c0_i32_1 = arith.constant 0 : i32
    return %c0_i32, %c0_i32_0 : i32, i32
  }
  func.func @transform_9(%arg0: i32) -> (i32, i32) {
    %c0_i32 = arith.constant 0 : i32
    %c0_i32_0 = arith.constant 0 : i32
    %c0_i32_1 = arith.constant 0 : i32
    return %c0_i32, %c0_i32_0 : i32, i32
  }
}

</mosaic_0001>

<bundles_post_ra>
// kernel: tpu_custom_call.1
= control target key start
LH: loop header
LB: loop body
LE: loop exit
PB: predicated region body
PF: predicated region fallthrough
CT: control target
= control target key end

     0   :  { %v306_v0 = vmov 0.0   ;;  %vm307_vm0 = vmmov 0   ;;  %vm54_vm1 = vcmask 523264   ;;  %vm156_vm2 = vcmask 261120   ;;  %s418_s1 = inlined_call_operand.vmem [shape: f32[64,32], index: 1, kind: input, shape index: {}]   ;;  %s419_s0 = inlined_call_operand.vmem [shape: f32[8,64], index: 0, kind: input, shape index: {}]   ;;  %s420_s5 = inlined_call_operand.vmem [shape: f32[32,1], index: 5, kind: input, shape index: {}]   ;;  %s421_s6 = inlined_call_operand.<no memory space> [shape: f32[1,1], index: 6, kind: input, shape index: {}]   ;;  %s422_s7 = inlined_call_operand.<no memory space> [shape: f32[1,1], index: 7, kind: input, shape index: {}]   ;;  %s423_s8 = inlined_call_operand.<no memory space> [shape: f32[1,1], index: 8, kind: input, shape index: {}]   ;;  %s424_s2 = inlined_call_operand.vmem [shape: f32[1,32], index: 2, kind: input, shape index: {}]   ;;  %s425_s3 = inlined_call_operand.vmem [shape: f32[1,32], index: 3, kind: input, shape index: {}]   ;;  %s426_s4 = inlined_call_operand.vmem [shape: f32[1,32], index: 4, kind: input, shape index: {}]   ;;  %s427_s9 = inlined_call_operand.vmem [shape: f32[8,1], index: 9, kind: output, shape index: {}]  }
   0x1   :  { %274 = vmatprep.subr.mxu0 %v306_v0  ;;  %v46_v1 = vld [vmem:[%s418_s1 + $0x38] sm:$0xff]  ;;  %v45_v2 = vld [vmem:[%s418_s1 + $0x30] sm:$0xff]  ;;  %290 = vmatprep.mubr.msk.f32.mxu0 %vm307_vm0, %v306_v0  ;;  %v44_v3 = vld [vmem:[%s418_s1 + $0x28] sm:$0xff]  ;;  %v14_v14 = vstv %s421_s6  ;;  %vm246_vm3 = vcmask 7168  }
   0x2   :  { %275 = vmatpush3.msra.mxu0 %v46_v1  ;;  %293 = vmatprep.subr.mxu1 %v306_v0  ;;  %v43_v4 = vld [vmem:[%s418_s1 + $0x20] sm:$0xff]  ;;  %v42_v5 = vld [vmem:[%s418_s1 + $0x18] sm:$0xff]  ;;  %v41_v6 = vld [vmem:[%s418_s1 + $0x10] sm:$0xff]  ;;  %v16_v15 = vstv %s422_s7  ;;  %15 = vst [vmem:[#allocation2] sm:$0x1] %v14_v14 }
   0x3   :  { %276 = vmatprep.subr.mxu0 %v306_v0  ;;  %301 = vmatprep.mubr.msk.f32.mxu1 %vm307_vm0, %v306_v0  ;;  %v40_v7 = vld [vmem:[%s418_s1 + $0x8] sm:$0xff]  ;;  %v39_v8 = vld [vmem:[%s418_s1] sm:$0xff]  ;;  %v148_v10 = vld [vmem:[%s420_s5 + $0x18] sm:$0xff]  ;;  %v18_v16 = vstv %s423_s8  ;;  %17 = vst [vmem:[#allocation3] sm:$0x1] %v16_v15 }
   0x4   :  { %277 = vmatpush3.msra.mxu0 %v45_v2  ;;  %v38_v9 = vld [vmem:[%s419_s0] sm:$0xff]  ;;  %294 = vmatpush3.msra.mxu1 %v148_v10  ;;  %v147_v11 = vld [vmem:[%s420_s5 + $0x10] sm:$0xff]  ;;  %v146_v12 = vld [vmem:[%s420_s5 + $0x8] sm:$0xff]  ;;  %19 = vst [vmem:[#allocation4] sm:$0x1] %v18_v16 }
   0x5   :  { %278 = vmatprep.subr.mxu0 %v306_v0  ;;  %295 = vmatprep.subr.mxu1 %v306_v0  ;;  %v145_v13 = vld [vmem:[%s420_s5] sm:$0xff] }
   0x6   :  { %279 = vmatpush3.msra.mxu0 %v44_v3  ;;  %296 = vmatpush3.msra.mxu1 %v147_v11  ;;  %v252_v17 = vld [vmem:[%s424_s2] ss:$0 sm:$0xff] }
   0x7   :  { %280 = vmatprep.subr.mxu0 %v306_v0  ;;  %297 = vmatprep.subr.mxu1 %v306_v0  ;;  %v254_v20 = vld [vmem:[%s425_s3] ss:$0 sm:$0xff] }
   0x8   :  { %281 = vmatpush3.msra.mxu0 %v43_v4  ;;  %298 = vmatpush3.msra.mxu1 %v146_v12  ;;  %v255_v23 = vld [vmem:[%s426_s4] ss:$0 sm:$0xff] }
   0x9   :  { %282 = vmatprep.subr.mxu0 %v306_v0  ;;  %299 = vmatprep.subr.mxu1 %v306_v0  ;;  %v256_v26 = vld [vmem:[#allocation2] ss:$0 sm:$0xff] }
   0xa   :  { %283 = vmatpush3.msra.mxu0 %v42_v5  ;;  %300 = vmatpush3.msra.mxu1 %v145_v13  ;;  %v258_v28 = vld [vmem:[#allocation3] ss:$0 sm:$0xff] }
   0xb   :  { %284 = vmatprep.subr.mxu0 %v306_v0  ;;  %v259_v30 = vld [vmem:[#allocation4] ss:$0 sm:$0xff] }
   0xc   :  { %285 = vmatpush3.msra.mxu0 %v41_v6 }
   0xd   :  { %286 = vmatprep.subr.mxu0 %v306_v0 }
   0xe   :  { %287 = vmatpush3.msra.mxu0 %v40_v7 }
   0xf   :  { %288 = vmatprep.subr.mxu0 %v306_v0 }
  0x10   :  { %289 = vmatpush3.msra.mxu0 %v39_v8 }
  0x11   :  { %291 = vmatmul.mubr.msk.f32.vlgmr.msra.gmra.mxu0 %vm54_vm1, %v38_v9 }
  0xd1   :  { %v124_v18 = vpop.f32.mrf.mxu0 }
  0xd2   :  { %v125_v19 = vadd.f32 %v252_v17, %v124_v18 }
  0xd3   :  { %v292_v21 = vpop.f32.mrf.mxu0 }
  0xd4   :  { %v128_v22 = vmax.f32 %v125_v19, 0.0 }
  0xd6   :  { %v136_v24 = vmul.f32 %v254_v20, %v128_v22 }
  0xd8   :  { %v144_v25 = vadd.f32 %v255_v23, %v136_v24 }
  0xda   :  { %302 = vmatmul.mubr.msk.f32.vlgmr.msra.gmra.mxu1 %vm156_vm2, %v144_v25 }
 0x19a   :  { %v226_v27 = vpop.f32.mrf.mxu1 }
 0x19b   :  { %v227_v29 = vadd.f32 %v256_v26, %v226_v27 }
 0x19c   :  { %v303_v31 = vpop.f32.mrf.mxu1 }
 0x19d   :  { %v237_v32 = vmul.f32 %v258_v28, %v227_v29 }
 0x19f   :  { %v245_v33 = vadd.f32 %v259_v30, %v237_v32 }
 0x1a1   :  { %247 = vst.msk [vmem:[%s427_s9] sm:$0xff] %vm246_vm3, %v245_v33 }

</bundles_post_ra>
